<compile_context>
chip_gen: v5e
topology: v5e:2x2
jax: 0.10.0
libtpu: 0.0.40
codegen_flags: <defaults>
</compile_context>

<pallas_src>
import functools

import jax
import jax.numpy as jnp
from jax.experimental import pallas as pl
from jax.experimental.pallas import tpu as pltpu


# ----------------------------------------------------------------------------
# Fused Pallas kernel
# ----------------------------------------------------------------------------

def _round_up(x, m):
    return (x + m - 1) // m * m


def _vmem_spec():
    return pl.BlockSpec(memory_space=pltpu.MemorySpace.VMEM)


def _fused_forward_kernel(
    ahat_ref, ahat_cyc_ref, pool_ref, x_ref,
    emb_w_ref, emb_b_ref,
    conv_w_ref, conv_b_ref, bn_g_ref, bn_b_ref,
    conv2_w_ref, conv2_b_ref, bn2_g_ref, bn2_b_ref,
    lin1_w_ref, lin1_b_ref, lin2_w_ref, lin2_b_ref,
    lin3_w_ref, lin3_b_ref,
    out_ref, *, n_layer, inv_n):
    f32 = jnp.float32
    bf16 = jnp.bfloat16

    ahat = ahat_ref[...]          # [N, N]  bf16
    ahat_cyc = ahat_cyc_ref[...]  # [N, N]  bf16
    pool = pool_ref[...]          # [Gp, N] bf16

    # Embedding (dropout p=0 == identity).  bf16 MXU operands, f32 accumulate.
    x0 = (jnp.dot(x_ref[...], emb_w_ref[...], preferred_element_type=f32)
          + emb_b_ref[...])                                         # [N, Hp] f32

    def gcn_bn_relu_res(adj_bf16, h_f32, w_bf16, b, gamma, beta):
        # GCNConv: A_hat @ (h @ W) + b
        t = jnp.dot(h_f32.astype(bf16), w_bf16, preferred_element_type=f32)
        z = jnp.dot(adj_bf16, t.astype(bf16), preferred_element_type=f32) + b
        # BatchNorm (training-mode batch stats, biased variance, eps=1e-5),
        # one-pass variance, gamma folded into a single scale vector.
        mean = jnp.sum(z, axis=0, keepdims=True) * inv_n
        ex2 = jnp.sum(z * z, axis=0, keepdims=True) * inv_n
        var = ex2 - mean * mean
        scale = gamma * jax.lax.rsqrt(var + 1e-5)
        zn = (z - mean) * scale + beta
        # ReLU + residual (single fused value; one store only at kernel end).
        return jnp.maximum(zn, 0.0) + h_f32

    gp = pool.shape[0]
    hp = lin1_b_ref.shape[-1]
    # lin1 over the virtual concat: sum_i pooled_i @ lin1_w_block[i]
    lin1_acc = jnp.zeros((gp, hp), f32)

    h = x0
    for i in range(n_layer):
        h = gcn_bn_relu_res(ahat, h, conv_w_ref[i], conv_b_ref[i],
                            bn_g_ref[i], bn_b_ref[i])
        pooled = jnp.dot(pool, h.astype(bf16), preferred_element_type=f32)
        lin1_acc = lin1_acc + jnp.dot(pooled.astype(bf16), lin1_w_ref[i],
                                      preferred_element_type=f32)

    # Cycle-adjacency branch (restarts from x0).
    h = gcn_bn_relu_res(ahat_cyc, x0, conv2_w_ref[...], conv2_b_ref[...],
                        bn2_g_ref[...], bn2_b_ref[...])
    pooled = jnp.dot(pool, h.astype(bf16), preferred_element_type=f32)
    lin1_acc = lin1_acc + jnp.dot(pooled.astype(bf16), lin1_w_ref[n_layer],
                                  preferred_element_type=f32)

    # MLP head: lin3(relu(lin2(relu(lin1(cat)))))
    h1 = jnp.maximum(lin1_acc + lin1_b_ref[...], 0.0)
    h2 = jnp.maximum(
        jnp.dot(h1.astype(bf16), lin2_w_ref[...], preferred_element_type=f32)
        + lin2_b_ref[...], 0.0)
    out_ref[...] = (jnp.dot(h2.astype(bf16), lin3_w_ref[...],
                            preferred_element_type=f32)
                    + lin3_b_ref[...])


# ----------------------------------------------------------------------------
# Glue (plain JAX): adjacency normalization, pooling matrix, parameter handling
# ----------------------------------------------------------------------------

def dense_gcn_norm(edge_index, num_nodes):
    """A_hat = D^-1/2 (A + I) D^-1/2, with A[target, source] = 1 per edge."""
    src, dst = edge_index[0], edge_index[1]
    A = jnp.zeros((num_nodes, num_nodes), jnp.float32).at[dst, src].add(1.0)
    A = A + jnp.eye(num_nodes, dtype=jnp.float32)
    deg = A.sum(axis=1)
    dinv = jax.lax.rsqrt(jnp.maximum(deg, 1e-12))
    return A * dinv[:, None] * dinv[None, :]


def mean_pool_matrix(batch, num_graphs, num_graphs_padded):
    counts = jnp.zeros((num_graphs_padded,), jnp.float32).at[batch].add(1.0)
    onehot = (jnp.arange(num_graphs_padded)[:, None] == batch[None, :]
              ).astype(jnp.float32)
    return onehot / jnp.maximum(counts, 1.0)[:, None]


def init_params(key, in_dim, hidden, out_dim, n_layer=3):
    def dense(k, fan_in, fan_out):
        scale = 1.0 / jnp.sqrt(jnp.float32(fan_in))
        kw, kb = jax.random.split(k)
        w = jax.random.uniform(kw, (fan_in, fan_out), jnp.float32, -scale, scale)
        b = jax.random.uniform(kb, (1, fan_out), jnp.float32, -scale, scale)
        return w, b

    keys = jax.random.split(key, 16)
    p = {}
    p["emb_w"], p["emb_b"] = dense(keys[0], in_dim, hidden)
    p["conv_w"], p["conv_b"], p["bn_g"], p["bn_b"] = [], [], [], []
    for i in range(n_layer):
        w, b = dense(keys[1 + i], hidden, hidden)
        p["conv_w"].append(w)
        p["conv_b"].append(b)
        p["bn_g"].append(jnp.ones((1, hidden), jnp.float32))
        p["bn_b"].append(jnp.zeros((1, hidden), jnp.float32))
    p["conv2_w"], p["conv2_b"] = dense(keys[5], hidden, hidden)
    p["bn2_g"] = jnp.ones((1, hidden), jnp.float32)
    p["bn2_b"] = jnp.zeros((1, hidden), jnp.float32)
    p["lin1_w"], p["lin1_b"] = dense(keys[6], hidden * (n_layer + 1), hidden)
    p["lin2_w"], p["lin2_b"] = dense(keys[7], hidden, hidden)
    p["lin3_w"], p["lin3_b"] = dense(keys[8], hidden, out_dim)
    return p


def pack_params(p, in_dim, hidden, out_dim, n_layer=3):
    """Zero-pad feature dims to multiples of 128 and cast matmul weights to bf16.

    Padded gamma/beta/bias columns are zero, so padded feature lanes stay exactly
    zero throughout the fused forward.
    """
    fp = _round_up(in_dim, 128)
    hp = _round_up(hidden, 128)
    op = _round_up(out_dim, 128)

    def pad2(a, r, c, dtype):
        out = jnp.zeros((r, c), dtype)
        return out.at[:a.shape[0], :a.shape[1]].set(a.astype(dtype))

    bf16, f32 = jnp.bfloat16, jnp.float32
    q = {}
    q["emb_w"] = pad2(p["emb_w"], fp, hp, bf16)
    q["emb_b"] = pad2(p["emb_b"], 1, hp, f32)
    q["conv_w"] = jnp.stack([pad2(w, hp, hp, bf16) for w in p["conv_w"]])
    q["conv_b"] = jnp.stack([pad2(b, 1, hp, f32) for b in p["conv_b"]])
    q["bn_g"] = jnp.stack([pad2(g, 1, hp, f32) for g in p["bn_g"]])   # pad cols = 0
    q["bn_b"] = jnp.stack([pad2(b, 1, hp, f32) for b in p["bn_b"]])
    q["conv2_w"] = pad2(p["conv2_w"], hp, hp, bf16)
    q["conv2_b"] = pad2(p["conv2_b"], 1, hp, f32)
    q["bn2_g"] = pad2(p["bn2_g"], 1, hp, f32)
    q["bn2_b"] = pad2(p["bn2_b"], 1, hp, f32)
    # Split lin1_w along its concat dimension into (n_layer+1) [hidden, hidden]
    # blocks -> partial dots inside the kernel instead of an XLA-side concat.
    blocks = [pad2(p["lin1_w"][i * hidden:(i + 1) * hidden, :], hp, hp, bf16)
              for i in range(n_layer + 1)]
    q["lin1_w"] = jnp.stack(blocks)
    q["lin1_b"] = pad2(p["lin1_b"], 1, hp, f32)
    q["lin2_w"] = pad2(p["lin2_w"], hp, hp, bf16)
    q["lin2_b"] = pad2(p["lin2_b"], 1, hp, f32)
    q["lin3_w"] = pad2(p["lin3_w"], hp, op, bf16)
    q["lin3_b"] = pad2(p["lin3_b"], 1, op, f32)
    return q


# ----------------------------------------------------------------------------
# Forward pass (one pallas_call)
# ----------------------------------------------------------------------------

def cy2c_gcn_3_concat_forward(packed, x, edge_index, cycle_index, batch,
                              *, num_graphs, out_dim, n_layer=3):
    n, in_dim = x.shape
    fp = packed["emb_w"].shape[0]
    hp = packed["emb_w"].shape[1]
    op = packed["lin3_w"].shape[1]
    gp = _round_up(num_graphs, 8)

    ahat = dense_gcn_norm(edge_index, n).astype(jnp.bfloat16)
    ahat_cyc = dense_gcn_norm(cycle_index, n).astype(jnp.bfloat16)
    pool = mean_pool_matrix(batch, num_graphs, gp).astype(jnp.bfloat16)

    xp = jnp.zeros((n, fp), jnp.bfloat16).at[:, :in_dim].set(
        x.astype(jnp.bfloat16))

    inputs = (ahat, ahat_cyc, pool, xp,
              packed["emb_w"], packed["emb_b"],
              packed["conv_w"], packed["conv_b"], packed["bn_g"], packed["bn_b"],
              packed["conv2_w"], packed["conv2_b"], packed["bn2_g"], packed["bn2_b"],
              packed["lin1_w"], packed["lin1_b"],
              packed["lin2_w"], packed["lin2_b"],
              packed["lin3_w"], packed["lin3_b"])

    layer_flops = 2 * (n * hp * hp + n * n * hp + gp * n * hp + gp * hp * hp)
    flops = (2 * n * fp * hp + (n_layer + 1) * layer_flops
             + 2 * gp * hp * hp + 2 * gp * hp * op)
    bytes_accessed = sum(int(a.size) * a.dtype.itemsize for a in inputs) \
        + gp * op * 4

    out_pad = pl.pallas_call(
        functools.partial(_fused_forward_kernel, n_layer=n_layer, inv_n=1.0 / n),
        out_shape=jax.ShapeDtypeStruct((gp, op), jnp.float32),
        in_specs=[_vmem_spec() for _ in inputs],
        out_specs=_vmem_spec(),
        cost_estimate=pl.CostEstimate(
            flops=int(flops),
            transcendentals=int((n_layer + 1) * hp),
            bytes_accessed=int(bytes_accessed)),
    )(*inputs)

    return out_pad[:num_graphs, :out_dim]


# ----------------------------------------------------------------------------
# Example run
# ----------------------------------------------------------------------------

if __name__ == "__main__":
    key = jax.random.PRNGKey(0)
    k_x, k_p = jax.random.split(key)

    # small shapes: 2 graphs, 8 nodes each, in_dim=8, hidden=32, out_dim=4
    num_graphs = 2
    nodes_per_graph = 8
    N = num_graphs * nodes_per_graph
    in_dim, hidden, out_dim = 8, 32, 4
    n_layer = 3

    x = jax.random.normal(k_x, (N, in_dim), jnp.float32)
    batch = jnp.repeat(jnp.arange(num_graphs, dtype=jnp.int32), nodes_per_graph)

    # edge_index: bidirectional ring within each graph  -> [2, 32]
    src, dst = [], []
    for g in range(num_graphs):
        off = g * nodes_per_graph
        for i in range(nodes_per_graph):
            j = (i + 1) % nodes_per_graph
            src += [off + i, off + j]
            dst += [off + j, off + i]
    edge_index = jnp.array([src, dst], dtype=jnp.int32)

    # cycle_index: bidirectional 4-cycle over first 4 nodes of each graph -> [2, 16]
    csrc, cdst = [], []
    for g in range(num_graphs):
        off = g * nodes_per_graph
        for i in range(4):
            j = (i + 1) % 4
            csrc += [off + i, off + j]
            cdst += [off + j, off + i]
    cycle_index = jnp.array([csrc, cdst], dtype=jnp.int32)

    params = init_params(k_p, in_dim, hidden, out_dim, n_layer=n_layer)
    packed = pack_params(params, in_dim, hidden, out_dim, n_layer=n_layer)

    fwd = jax.jit(functools.partial(cy2c_gcn_3_concat_forward,
                                    num_graphs=num_graphs, out_dim=out_dim,
                                    n_layer=n_layer))
    out = fwd(packed, x, edge_index, cycle_index, batch)
    out = jax.block_until_ready(out)

    assert out.shape == (num_graphs, out_dim), out.shape
    assert jnp.all(jnp.isfinite(out))
    print("KERNEL_OK")
</pallas_src>

<mosaic_0001>
module attributes {stable_mosaic.version = 11 : i64} {
  func.func @_fused_forward_kernel(%arg0: memref<16x16xbf16, #tpu.memory_space<vmem>>, %arg1: memref<16x16xbf16, #tpu.memory_space<vmem>>, %arg2: memref<8x16xbf16, #tpu.memory_space<vmem>>, %arg3: memref<16x128xbf16, #tpu.memory_space<vmem>>, %arg4: memref<128x128xbf16, #tpu.memory_space<vmem>>, %arg5: memref<1x128xf32, #tpu.memory_space<vmem>>, %arg6: memref<3x128x128xbf16, #tpu.memory_space<vmem>>, %arg7: memref<3x1x128xf32, #tpu.memory_space<vmem>>, %arg8: memref<3x1x128xf32, #tpu.memory_space<vmem>>, %arg9: memref<3x1x128xf32, #tpu.memory_space<vmem>>, %arg10: memref<128x128xbf16, #tpu.memory_space<vmem>>, %arg11: memref<1x128xf32, #tpu.memory_space<vmem>>, %arg12: memref<1x128xf32, #tpu.memory_space<vmem>>, %arg13: memref<1x128xf32, #tpu.memory_space<vmem>>, %arg14: memref<4x128x128xbf16, #tpu.memory_space<vmem>>, %arg15: memref<1x128xf32, #tpu.memory_space<vmem>>, %arg16: memref<128x128xbf16, #tpu.memory_space<vmem>>, %arg17: memref<1x128xf32, #tpu.memory_space<vmem>>, %arg18: memref<128x128xbf16, #tpu.memory_space<vmem>>, %arg19: memref<1x128xf32, #tpu.memory_space<vmem>>, %arg20: memref<8x128xf32, #tpu.memory_space<vmem>>) attributes {dimension_semantics = [], scalar_prefetch = 0 : i64, scratch_operands = 0 : i64, tpu.core_type = #tpu.core_type<tc>} {
    %c0 = arith.constant 0 : index
    %c0_0 = arith.constant 0 : index
    %0 = vector.load %arg0[%c0, %c0_0] : memref<16x16xbf16, #tpu.memory_space<vmem>>, vector<16x16xbf16>
    %c0_1 = arith.constant 0 : index
    %c0_2 = arith.constant 0 : index
    %1 = vector.load %arg1[%c0_1, %c0_2] : memref<16x16xbf16, #tpu.memory_space<vmem>>, vector<16x16xbf16>
    %c0_3 = arith.constant 0 : index
    %c0_4 = arith.constant 0 : index
    %2 = vector.load %arg2[%c0_3, %c0_4] : memref<8x16xbf16, #tpu.memory_space<vmem>>, vector<8x16xbf16>
    %c0_5 = arith.constant 0 : index
    %c0_6 = arith.constant 0 : index
    %3 = vector.load %arg3[%c0_5, %c0_6] : memref<16x128xbf16, #tpu.memory_space<vmem>>, vector<16x128xbf16>
    %c0_7 = arith.constant 0 : index
    %c0_8 = arith.constant 0 : index
    %4 = vector.load %arg4[%c0_7, %c0_8] : memref<128x128xbf16, #tpu.memory_space<vmem>>, vector<128x128xbf16>
    %cst = arith.constant dense<0.000000e+00> : vector<16x128xf32>
    %5 = tpu.matmul %3, %4, %cst {dimension_numbers = #tpu.dot_dimension_numbers<[1], [0], [0], [1], [0, 0, 1, 1], [], []>} : vector<16x128xbf16>, vector<128x128xbf16>, vector<16x128xf32> -> vector<16x128xf32>
    %c0_9 = arith.constant 0 : index
    %c0_10 = arith.constant 0 : index
    %6 = vector.load %arg5[%c0_9, %c0_10] : memref<1x128xf32, #tpu.memory_space<vmem>>, vector<1x128xf32>
    %7 = vector.broadcast %6 : vector<1x128xf32> to vector<16x128xf32>
    %8 = arith.addf %5, %7 : vector<16x128xf32>
    %cst_11 = arith.constant 0.000000e+00 : f32
    %9 = vector.broadcast %cst_11 : f32 to vector<8x128xf32>
    %c0_12 = arith.constant 0 : index
    %c0_13 = arith.constant 0 : index
    %c0_14 = arith.constant 0 : index
    %10 = vector.load %arg6[%c0_12, %c0_13, %c0_14] : memref<3x128x128xbf16, #tpu.memory_space<vmem>>, vector<1x128x128xbf16>
    %11 = vector.shape_cast %10 : vector<1x128x128xbf16> to vector<128x128xbf16>
    %c0_15 = arith.constant 0 : index
    %c0_16 = arith.constant 0 : index
    %c0_17 = arith.constant 0 : index
    %12 = vector.load %arg7[%c0_15, %c0_16, %c0_17] : memref<3x1x128xf32, #tpu.memory_space<vmem>>, vector<1x1x128xf32>
    %13 = vector.shape_cast %12 : vector<1x1x128xf32> to vector<1x128xf32>
    %c0_18 = arith.constant 0 : index
    %c0_19 = arith.constant 0 : index
    %c0_20 = arith.constant 0 : index
    %14 = vector.load %arg8[%c0_18, %c0_19, %c0_20] : memref<3x1x128xf32, #tpu.memory_space<vmem>>, vector<1x1x128xf32>
    %15 = vector.shape_cast %14 : vector<1x1x128xf32> to vector<1x128xf32>
    %c0_21 = arith.constant 0 : index
    %c0_22 = arith.constant 0 : index
    %c0_23 = arith.constant 0 : index
    %16 = vector.load %arg9[%c0_21, %c0_22, %c0_23] : memref<3x1x128xf32, #tpu.memory_space<vmem>>, vector<1x1x128xf32>
    %17 = vector.shape_cast %16 : vector<1x1x128xf32> to vector<1x128xf32>
    %18 = arith.truncf %8 : vector<16x128xf32> to vector<16x128xbf16>
    %cst_24 = arith.constant dense<0.000000e+00> : vector<16x128xf32>
    %19 = tpu.matmul %18, %11, %cst_24 {dimension_numbers = #tpu.dot_dimension_numbers<[1], [0], [0], [1], [0, 0, 1, 1], [], []>} : vector<16x128xbf16>, vector<128x128xbf16>, vector<16x128xf32> -> vector<16x128xf32>
    %20 = arith.truncf %19 : vector<16x128xf32> to vector<16x128xbf16>
    %cst_25 = arith.constant dense<0.000000e+00> : vector<16x128xf32>
    %21 = tpu.matmul %0, %20, %cst_25 {dimension_numbers = #tpu.dot_dimension_numbers<[1], [0], [0], [1], [0, 0, 1, 1], [], []>} : vector<16x16xbf16>, vector<16x128xbf16>, vector<16x128xf32> -> vector<16x128xf32>
    %22 = vector.broadcast %13 : vector<1x128xf32> to vector<16x128xf32>
    %23 = arith.addf %21, %22 : vector<16x128xf32>
    %cst_26 = arith.constant dense<0.000000e+00> : vector<128xf32>
    %24 = vector.multi_reduction <add>, %23, %cst_26 [0] : vector<16x128xf32> to vector<128xf32>
    %25 = vector.shape_cast %24 : vector<128xf32> to vector<1x128xf32>
    %cst_27 = arith.constant 6.250000e-02 : f32
    %26 = vector.broadcast %cst_27 : f32 to vector<1x128xf32>
    %27 = arith.mulf %25, %26 : vector<1x128xf32>
    %28 = arith.mulf %23, %23 : vector<16x128xf32>
    %cst_28 = arith.constant dense<0.000000e+00> : vector<128xf32>
    %29 = vector.multi_reduction <add>, %28, %cst_28 [0] : vector<16x128xf32> to vector<128xf32>
    %30 = vector.shape_cast %29 : vector<128xf32> to vector<1x128xf32>
    %cst_29 = arith.constant 6.250000e-02 : f32
    %31 = vector.broadcast %cst_29 : f32 to vector<1x128xf32>
    %32 = arith.mulf %30, %31 : vector<1x128xf32>
    %33 = arith.mulf %27, %27 : vector<1x128xf32>
    %34 = arith.subf %32, %33 : vector<1x128xf32>
    %cst_30 = arith.constant 9.99999974E-6 : f32
    %35 = vector.broadcast %cst_30 : f32 to vector<1x128xf32>
    %36 = arith.addf %34, %35 : vector<1x128xf32>
    %37 = math.rsqrt %36 : vector<1x128xf32>
    %38 = arith.mulf %15, %37 : vector<1x128xf32>
    %39 = vector.broadcast %27 : vector<1x128xf32> to vector<16x128xf32>
    %40 = arith.subf %23, %39 : vector<16x128xf32>
    %41 = vector.broadcast %38 : vector<1x128xf32> to vector<16x128xf32>
    %42 = arith.mulf %40, %41 : vector<16x128xf32>
    %43 = vector.broadcast %17 : vector<1x128xf32> to vector<16x128xf32>
    %44 = arith.addf %42, %43 : vector<16x128xf32>
    %cst_31 = arith.constant 0.000000e+00 : f32
    %45 = vector.broadcast %cst_31 : f32 to vector<16x128xf32>
    %46 = arith.maximumf %44, %45 : vector<16x128xf32>
    %47 = arith.addf %46, %8 : vector<16x128xf32>
    %48 = arith.truncf %47 : vector<16x128xf32> to vector<16x128xbf16>
    %cst_32 = arith.constant dense<0.000000e+00> : vector<8x128xf32>
    %49 = tpu.matmul %2, %48, %cst_32 {dimension_numbers = #tpu.dot_dimension_numbers<[1], [0], [0], [1], [0, 0, 1, 1], [], []>} : vector<8x16xbf16>, vector<16x128xbf16>, vector<8x128xf32> -> vector<8x128xf32>
    %50 = arith.truncf %49 : vector<8x128xf32> to vector<8x128xbf16>
    %c0_33 = arith.constant 0 : index
    %c0_34 = arith.constant 0 : index
    %c0_35 = arith.constant 0 : index
    %51 = vector.load %arg14[%c0_33, %c0_34, %c0_35] : memref<4x128x128xbf16, #tpu.memory_space<vmem>>, vector<1x128x128xbf16>
    %52 = vector.shape_cast %51 : vector<1x128x128xbf16> to vector<128x128xbf16>
    %cst_36 = arith.constant dense<0.000000e+00> : vector<8x128xf32>
    %53 = tpu.matmul %50, %52, %cst_36 {dimension_numbers = #tpu.dot_dimension_numbers<[1], [0], [0], [1], [0, 0, 1, 1], [], []>} : vector<8x128xbf16>, vector<128x128xbf16>, vector<8x128xf32> -> vector<8x128xf32>
    %54 = arith.addf %9, %53 : vector<8x128xf32>
    %c1 = arith.constant 1 : index
    %c0_37 = arith.constant 0 : index
    %c0_38 = arith.constant 0 : index
    %55 = vector.load %arg6[%c1, %c0_37, %c0_38] : memref<3x128x128xbf16, #tpu.memory_space<vmem>>, vector<1x128x128xbf16>
    %56 = vector.shape_cast %55 : vector<1x128x128xbf16> to vector<128x128xbf16>
    %c1_39 = arith.constant 1 : index
    %c0_40 = arith.constant 0 : index
    %c0_41 = arith.constant 0 : index
    %57 = vector.load %arg7[%c1_39, %c0_40, %c0_41] : memref<3x1x128xf32, #tpu.memory_space<vmem>>, vector<1x1x128xf32>
    %58 = vector.shape_cast %57 : vector<1x1x128xf32> to vector<1x128xf32>
    %c1_42 = arith.constant 1 : index
    %c0_43 = arith.constant 0 : index
    %c0_44 = arith.constant 0 : index
    %59 = vector.load %arg8[%c1_42, %c0_43, %c0_44] : memref<3x1x128xf32, #tpu.memory_space<vmem>>, vector<1x1x128xf32>
    %60 = vector.shape_cast %59 : vector<1x1x128xf32> to vector<1x128xf32>
    %c1_45 = arith.constant 1 : index
    %c0_46 = arith.constant 0 : index
    %c0_47 = arith.constant 0 : index
    %61 = vector.load %arg9[%c1_45, %c0_46, %c0_47] : memref<3x1x128xf32, #tpu.memory_space<vmem>>, vector<1x1x128xf32>
    %62 = vector.shape_cast %61 : vector<1x1x128xf32> to vector<1x128xf32>
    %63 = arith.truncf %47 : vector<16x128xf32> to vector<16x128xbf16>
    %cst_48 = arith.constant dense<0.000000e+00> : vector<16x128xf32>
    %64 = tpu.matmul %63, %56, %cst_48 {dimension_numbers = #tpu.dot_dimension_numbers<[1], [0], [0], [1], [0, 0, 1, 1], [], []>} : vector<16x128xbf16>, vector<128x128xbf16>, vector<16x128xf32> -> vector<16x128xf32>
    %65 = arith.truncf %64 : vector<16x128xf32> to vector<16x128xbf16>
    %cst_49 = arith.constant dense<0.000000e+00> : vector<16x128xf32>
    %66 = tpu.matmul %0, %65, %cst_49 {dimension_numbers = #tpu.dot_dimension_numbers<[1], [0], [0], [1], [0, 0, 1, 1], [], []>} : vector<16x16xbf16>, vector<16x128xbf16>, vector<16x128xf32> -> vector<16x128xf32>
    %67 = vector.broadcast %58 : vector<1x128xf32> to vector<16x128xf32>
    %68 = arith.addf %66, %67 : vector<16x128xf32>
    %cst_50 = arith.constant dense<0.000000e+00> : vector<128xf32>
    %69 = vector.multi_reduction <add>, %68, %cst_50 [0] : vector<16x128xf32> to vector<128xf32>
    %70 = vector.shape_cast %69 : vector<128xf32> to vector<1x128xf32>
    %cst_51 = arith.constant 6.250000e-02 : f32
    %71 = vector.broadcast %cst_51 : f32 to vector<1x128xf32>
    %72 = arith.mulf %70, %71 : vector<1x128xf32>
    %73 = arith.mulf %68, %68 : vector<16x128xf32>
    %cst_52 = arith.constant dense<0.000000e+00> : vector<128xf32>
    %74 = vector.multi_reduction <add>, %73, %cst_52 [0] : vector<16x128xf32> to vector<128xf32>
    %75 = vector.shape_cast %74 : vector<128xf32> to vector<1x128xf32>
    %cst_53 = arith.constant 6.250000e-02 : f32
    %76 = vector.broadcast %cst_53 : f32 to vector<1x128xf32>
    %77 = arith.mulf %75, %76 : vector<1x128xf32>
    %78 = arith.mulf %72, %72 : vector<1x128xf32>
    %79 = arith.subf %77, %78 : vector<1x128xf32>
    %cst_54 = arith.constant 9.99999974E-6 : f32
    %80 = vector.broadcast %cst_54 : f32 to vector<1x128xf32>
    %81 = arith.addf %79, %80 : vector<1x128xf32>
    %82 = math.rsqrt %81 : vector<1x128xf32>
    %83 = arith.mulf %60, %82 : vector<1x128xf32>
    %84 = vector.broadcast %72 : vector<1x128xf32> to vector<16x128xf32>
    %85 = arith.subf %68, %84 : vector<16x128xf32>
    %86 = vector.broadcast %83 : vector<1x128xf32> to vector<16x128xf32>
    %87 = arith.mulf %85, %86 : vector<16x128xf32>
    %88 = vector.broadcast %62 : vector<1x128xf32> to vector<16x128xf32>
    %89 = arith.addf %87, %88 : vector<16x128xf32>
    %cst_55 = arith.constant 0.000000e+00 : f32
    %90 = vector.broadcast %cst_55 : f32 to vector<16x128xf32>
    %91 = arith.maximumf %89, %90 : vector<16x128xf32>
    %92 = arith.addf %91, %47 : vector<16x128xf32>
    %93 = arith.truncf %92 : vector<16x128xf32> to vector<16x128xbf16>
    %cst_56 = arith.constant dense<0.000000e+00> : vector<8x128xf32>
    %94 = tpu.matmul %2, %93, %cst_56 {dimension_numbers = #tpu.dot_dimension_numbers<[1], [0], [0], [1], [0, 0, 1, 1], [], []>} : vector<8x16xbf16>, vector<16x128xbf16>, vector<8x128xf32> -> vector<8x128xf32>
    %95 = arith.truncf %94 : vector<8x128xf32> to vector<8x128xbf16>
    %c1_57 = arith.constant 1 : index
    %c0_58 = arith.constant 0 : index
    %c0_59 = arith.constant 0 : index
    %96 = vector.load %arg14[%c1_57, %c0_58, %c0_59] : memref<4x128x128xbf16, #tpu.memory_space<vmem>>, vector<1x128x128xbf16>
    %97 = vector.shape_cast %96 : vector<1x128x128xbf16> to vector<128x128xbf16>
    %cst_60 = arith.constant dense<0.000000e+00> : vector<8x128xf32>
    %98 = tpu.matmul %95, %97, %cst_60 {dimension_numbers = #tpu.dot_dimension_numbers<[1], [0], [0], [1], [0, 0, 1, 1], [], []>} : vector<8x128xbf16>, vector<128x128xbf16>, vector<8x128xf32> -> vector<8x128xf32>
    %99 = arith.addf %54, %98 : vector<8x128xf32>
    %c2 = arith.constant 2 : index
    %c0_61 = arith.constant 0 : index
    %c0_62 = arith.constant 0 : index
    %100 = vector.load %arg6[%c2, %c0_61, %c0_62] : memref<3x128x128xbf16, #tpu.memory_space<vmem>>, vector<1x128x128xbf16>
    %101 = vector.shape_cast %100 : vector<1x128x128xbf16> to vector<128x128xbf16>
    %c2_63 = arith.constant 2 : index
    %c0_64 = arith.constant 0 : index
    %c0_65 = arith.constant 0 : index
    %102 = vector.load %arg7[%c2_63, %c0_64, %c0_65] : memref<3x1x128xf32, #tpu.memory_space<vmem>>, vector<1x1x128xf32>
    %103 = vector.shape_cast %102 : vector<1x1x128xf32> to vector<1x128xf32>
    %c2_66 = arith.constant 2 : index
    %c0_67 = arith.constant 0 : index
    %c0_68 = arith.constant 0 : index
    %104 = vector.load %arg8[%c2_66, %c0_67, %c0_68] : memref<3x1x128xf32, #tpu.memory_space<vmem>>, vector<1x1x128xf32>
    %105 = vector.shape_cast %104 : vector<1x1x128xf32> to vector<1x128xf32>
    %c2_69 = arith.constant 2 : index
    %c0_70 = arith.constant 0 : index
    %c0_71 = arith.constant 0 : index
    %106 = vector.load %arg9[%c2_69, %c0_70, %c0_71] : memref<3x1x128xf32, #tpu.memory_space<vmem>>, vector<1x1x128xf32>
    %107 = vector.shape_cast %106 : vector<1x1x128xf32> to vector<1x128xf32>
    %108 = arith.truncf %92 : vector<16x128xf32> to vector<16x128xbf16>
    %cst_72 = arith.constant dense<0.000000e+00> : vector<16x128xf32>
    %109 = tpu.matmul %108, %101, %cst_72 {dimension_numbers = #tpu.dot_dimension_numbers<[1], [0], [0], [1], [0, 0, 1, 1], [], []>} : vector<16x128xbf16>, vector<128x128xbf16>, vector<16x128xf32> -> vector<16x128xf32>
    %110 = arith.truncf %109 : vector<16x128xf32> to vector<16x128xbf16>
    %cst_73 = arith.constant dense<0.000000e+00> : vector<16x128xf32>
    %111 = tpu.matmul %0, %110, %cst_73 {dimension_numbers = #tpu.dot_dimension_numbers<[1], [0], [0], [1], [0, 0, 1, 1], [], []>} : vector<16x16xbf16>, vector<16x128xbf16>, vector<16x128xf32> -> vector<16x128xf32>
    %112 = vector.broadcast %103 : vector<1x128xf32> to vector<16x128xf32>
    %113 = arith.addf %111, %112 : vector<16x128xf32>
    %cst_74 = arith.constant dense<0.000000e+00> : vector<128xf32>
    %114 = vector.multi_reduction <add>, %113, %cst_74 [0] : vector<16x128xf32> to vector<128xf32>
    %115 = vector.shape_cast %114 : vector<128xf32> to vector<1x128xf32>
    %cst_75 = arith.constant 6.250000e-02 : f32
    %116 = vector.broadcast %cst_75 : f32 to vector<1x128xf32>
    %117 = arith.mulf %115, %116 : vector<1x128xf32>
    %118 = arith.mulf %113, %113 : vector<16x128xf32>
    %cst_76 = arith.constant dense<0.000000e+00> : vector<128xf32>
    %119 = vector.multi_reduction <add>, %118, %cst_76 [0] : vector<16x128xf32> to vector<128xf32>
    %120 = vector.shape_cast %119 : vector<128xf32> to vector<1x128xf32>
    %cst_77 = arith.constant 6.250000e-02 : f32
    %121 = vector.broadcast %cst_77 : f32 to vector<1x128xf32>
    %122 = arith.mulf %120, %121 : vector<1x128xf32>
    %123 = arith.mulf %117, %117 : vector<1x128xf32>
    %124 = arith.subf %122, %123 : vector<1x128xf32>
    %cst_78 = arith.constant 9.99999974E-6 : f32
    %125 = vector.broadcast %cst_78 : f32 to vector<1x128xf32>
    %126 = arith.addf %124, %125 : vector<1x128xf32>
    %127 = math.rsqrt %126 : vector<1x128xf32>
    %128 = arith.mulf %105, %127 : vector<1x128xf32>
    %129 = vector.broadcast %117 : vector<1x128xf32> to vector<16x128xf32>
    %130 = arith.subf %113, %129 : vector<16x128xf32>
    %131 = vector.broadcast %128 : vector<1x128xf32> to vector<16x128xf32>
    %132 = arith.mulf %130, %131 : vector<16x128xf32>
    %133 = vector.broadcast %107 : vector<1x128xf32> to vector<16x128xf32>
    %134 = arith.addf %132, %133 : vector<16x128xf32>
    %cst_79 = arith.constant 0.000000e+00 : f32
    %135 = vector.broadcast %cst_79 : f32 to vector<16x128xf32>
    %136 = arith.maximumf %134, %135 : vector<16x128xf32>
    %137 = arith.addf %136, %92 : vector<16x128xf32>
    %138 = arith.truncf %137 : vector<16x128xf32> to vector<16x128xbf16>
    %cst_80 = arith.constant dense<0.000000e+00> : vector<8x128xf32>
    %139 = tpu.matmul %2, %138, %cst_80 {dimension_numbers = #tpu.dot_dimension_numbers<[1], [0], [0], [1], [0, 0, 1, 1], [], []>} : vector<8x16xbf16>, vector<16x128xbf16>, vector<8x128xf32> -> vector<8x128xf32>
    %140 = arith.truncf %139 : vector<8x128xf32> to vector<8x128xbf16>
    %c2_81 = arith.constant 2 : index
    %c0_82 = arith.constant 0 : index
    %c0_83 = arith.constant 0 : index
    %141 = vector.load %arg14[%c2_81, %c0_82, %c0_83] : memref<4x128x128xbf16, #tpu.memory_space<vmem>>, vector<1x128x128xbf16>
    %142 = vector.shape_cast %141 : vector<1x128x128xbf16> to vector<128x128xbf16>
    %cst_84 = arith.constant dense<0.000000e+00> : vector<8x128xf32>
    %143 = tpu.matmul %140, %142, %cst_84 {dimension_numbers = #tpu.dot_dimension_numbers<[1], [0], [0], [1], [0, 0, 1, 1], [], []>} : vector<8x128xbf16>, vector<128x128xbf16>, vector<8x128xf32> -> vector<8x128xf32>
    %144 = arith.addf %99, %143 : vector<8x128xf32>
    %c0_85 = arith.constant 0 : index
    %c0_86 = arith.constant 0 : index
    %145 = vector.load %arg10[%c0_85, %c0_86] : memref<128x128xbf16, #tpu.memory_space<vmem>>, vector<128x128xbf16>
    %c0_87 = arith.constant 0 : index
    %c0_88 = arith.constant 0 : index
    %146 = vector.load %arg11[%c0_87, %c0_88] : memref<1x128xf32, #tpu.memory_space<vmem>>, vector<1x128xf32>
    %c0_89 = arith.constant 0 : index
    %c0_90 = arith.constant 0 : index
    %147 = vector.load %arg12[%c0_89, %c0_90] : memref<1x128xf32, #tpu.memory_space<vmem>>, vector<1x128xf32>
    %c0_91 = arith.constant 0 : index
    %c0_92 = arith.constant 0 : index
    %148 = vector.load %arg13[%c0_91, %c0_92] : memref<1x128xf32, #tpu.memory_space<vmem>>, vector<1x128xf32>
    %149 = arith.truncf %8 : vector<16x128xf32> to vector<16x128xbf16>
    %cst_93 = arith.constant dense<0.000000e+00> : vector<16x128xf32>
    %150 = tpu.matmul %149, %145, %cst_93 {dimension_numbers = #tpu.dot_dimension_numbers<[1], [0], [0], [1], [0, 0, 1, 1], [], []>} : vector<16x128xbf16>, vector<128x128xbf16>, vector<16x128xf32> -> vector<16x128xf32>
    %151 = arith.truncf %150 : vector<16x128xf32> to vector<16x128xbf16>
    %cst_94 = arith.constant dense<0.000000e+00> : vector<16x128xf32>
    %152 = tpu.matmul %1, %151, %cst_94 {dimension_numbers = #tpu.dot_dimension_numbers<[1], [0], [0], [1], [0, 0, 1, 1], [], []>} : vector<16x16xbf16>, vector<16x128xbf16>, vector<16x128xf32> -> vector<16x128xf32>
    %153 = vector.broadcast %146 : vector<1x128xf32> to vector<16x128xf32>
    %154 = arith.addf %152, %153 : vector<16x128xf32>
    %cst_95 = arith.constant dense<0.000000e+00> : vector<128xf32>
    %155 = vector.multi_reduction <add>, %154, %cst_95 [0] : vector<16x128xf32> to vector<128xf32>
    %156 = vector.shape_cast %155 : vector<128xf32> to vector<1x128xf32>
    %cst_96 = arith.constant 6.250000e-02 : f32
    %157 = vector.broadcast %cst_96 : f32 to vector<1x128xf32>
    %158 = arith.mulf %156, %157 : vector<1x128xf32>
    %159 = arith.mulf %154, %154 : vector<16x128xf32>
    %cst_97 = arith.constant dense<0.000000e+00> : vector<128xf32>
    %160 = vector.multi_reduction <add>, %159, %cst_97 [0] : vector<16x128xf32> to vector<128xf32>
    %161 = vector.shape_cast %160 : vector<128xf32> to vector<1x128xf32>
    %cst_98 = arith.constant 6.250000e-02 : f32
    %162 = vector.broadcast %cst_98 : f32 to vector<1x128xf32>
    %163 = arith.mulf %161, %162 : vector<1x128xf32>
    %164 = arith.mulf %158, %158 : vector<1x128xf32>
    %165 = arith.subf %163, %164 : vector<1x128xf32>
    %cst_99 = arith.constant 9.99999974E-6 : f32
    %166 = vector.broadcast %cst_99 : f32 to vector<1x128xf32>
    %167 = arith.addf %165, %166 : vector<1x128xf32>
    %168 = math.rsqrt %167 : vector<1x128xf32>
    %169 = arith.mulf %147, %168 : vector<1x128xf32>
    %170 = vector.broadcast %158 : vector<1x128xf32> to vector<16x128xf32>
    %171 = arith.subf %154, %170 : vector<16x128xf32>
    %172 = vector.broadcast %169 : vector<1x128xf32> to vector<16x128xf32>
    %173 = arith.mulf %171, %172 : vector<16x128xf32>
    %174 = vector.broadcast %148 : vector<1x128xf32> to vector<16x128xf32>
    %175 = arith.addf %173, %174 : vector<16x128xf32>
    %cst_100 = arith.constant 0.000000e+00 : f32
    %176 = vector.broadcast %cst_100 : f32 to vector<16x128xf32>
    %177 = arith.maximumf %175, %176 : vector<16x128xf32>
    %178 = arith.addf %177, %8 : vector<16x128xf32>
    %179 = arith.truncf %178 : vector<16x128xf32> to vector<16x128xbf16>
    %cst_101 = arith.constant dense<0.000000e+00> : vector<8x128xf32>
    %180 = tpu.matmul %2, %179, %cst_101 {dimension_numbers = #tpu.dot_dimension_numbers<[1], [0], [0], [1], [0, 0, 1, 1], [], []>} : vector<8x16xbf16>, vector<16x128xbf16>, vector<8x128xf32> -> vector<8x128xf32>
    %181 = arith.truncf %180 : vector<8x128xf32> to vector<8x128xbf16>
    %c3 = arith.constant 3 : index
    %c0_102 = arith.constant 0 : index
    %c0_103 = arith.constant 0 : index
    %182 = vector.load %arg14[%c3, %c0_102, %c0_103] : memref<4x128x128xbf16, #tpu.memory_space<vmem>>, vector<1x128x128xbf16>
    %183 = vector.shape_cast %182 : vector<1x128x128xbf16> to vector<128x128xbf16>
    %cst_104 = arith.constant dense<0.000000e+00> : vector<8x128xf32>
    %184 = tpu.matmul %181, %183, %cst_104 {dimension_numbers = #tpu.dot_dimension_numbers<[1], [0], [0], [1], [0, 0, 1, 1], [], []>} : vector<8x128xbf16>, vector<128x128xbf16>, vector<8x128xf32> -> vector<8x128xf32>
    %185 = arith.addf %144, %184 : vector<8x128xf32>
    %c0_105 = arith.constant 0 : index
    %c0_106 = arith.constant 0 : index
    %186 = vector.load %arg15[%c0_105, %c0_106] : memref<1x128xf32, #tpu.memory_space<vmem>>, vector<1x128xf32>
    %187 = vector.broadcast %186 : vector<1x128xf32> to vector<8x128xf32>
    %188 = arith.addf %185, %187 : vector<8x128xf32>
    %cst_107 = arith.constant 0.000000e+00 : f32
    %189 = vector.broadcast %cst_107 : f32 to vector<8x128xf32>
    %190 = arith.maximumf %188, %189 : vector<8x128xf32>
    %191 = arith.truncf %190 : vector<8x128xf32> to vector<8x128xbf16>
    %c0_108 = arith.constant 0 : index
    %c0_109 = arith.constant 0 : index
    %192 = vector.load %arg16[%c0_108, %c0_109] : memref<128x128xbf16, #tpu.memory_space<vmem>>, vector<128x128xbf16>
    %cst_110 = arith.constant dense<0.000000e+00> : vector<8x128xf32>
    %193 = tpu.matmul %191, %192, %cst_110 {dimension_numbers = #tpu.dot_dimension_numbers<[1], [0], [0], [1], [0, 0, 1, 1], [], []>} : vector<8x128xbf16>, vector<128x128xbf16>, vector<8x128xf32> -> vector<8x128xf32>
    %c0_111 = arith.constant 0 : index
    %c0_112 = arith.constant 0 : index
    %194 = vector.load %arg17[%c0_111, %c0_112] : memref<1x128xf32, #tpu.memory_space<vmem>>, vector<1x128xf32>
    %195 = vector.broadcast %194 : vector<1x128xf32> to vector<8x128xf32>
    %196 = arith.addf %193, %195 : vector<8x128xf32>
    %cst_113 = arith.constant 0.000000e+00 : f32
    %197 = vector.broadcast %cst_113 : f32 to vector<8x128xf32>
    %198 = arith.maximumf %196, %197 : vector<8x128xf32>
    %199 = arith.truncf %198 : vector<8x128xf32> to vector<8x128xbf16>
    %c0_114 = arith.constant 0 : index
    %c0_115 = arith.constant 0 : index
    %200 = vector.load %arg18[%c0_114, %c0_115] : memref<128x128xbf16, #tpu.memory_space<vmem>>, vector<128x128xbf16>
    %cst_116 = arith.constant dense<0.000000e+00> : vector<8x128xf32>
    %201 = tpu.matmul %199, %200, %cst_116 {dimension_numbers = #tpu.dot_dimension_numbers<[1], [0], [0], [1], [0, 0, 1, 1], [], []>} : vector<8x128xbf16>, vector<128x128xbf16>, vector<8x128xf32> -> vector<8x128xf32>
    %c0_117 = arith.constant 0 : index
    %c0_118 = arith.constant 0 : index
    %202 = vector.load %arg19[%c0_117, %c0_118] : memref<1x128xf32, #tpu.memory_space<vmem>>, vector<1x128xf32>
    %203 = vector.broadcast %202 : vector<1x128xf32> to vector<8x128xf32>
    %204 = arith.addf %201, %203 : vector<8x128xf32>
    %c0_119 = arith.constant 0 : index
    %c0_120 = arith.constant 0 : index
    %205 = vector.load %arg20[%c0_119, %c0_120] : memref<8x128xf32, #tpu.memory_space<vmem>>, vector<8x128xf32>
    tpu.vector_store %arg20[%c0_119, %c0_120], %204 {strides = array<i32>} : memref<8x128xf32, #tpu.memory_space<vmem>>, vector<8x128xf32>,
    return
  }
}

</mosaic_0001>

<bundles_post_ra>
// kernel: cy2c_gcn_3_concat_forward.1
= control target key start
LH: loop header
LB: loop body
LE: loop exit
PB: predicated region body
PF: predicated region fallthrough
CT: control target
= control target key end

     0   :  { %vm252_vm0 = vcmask 130048   ;;  %s2419_s4 = inlined_call_operand.vmem [shape: bf16[128,128], index: 4, kind: input, shape index: {}]   ;;  %s2420_s6 = inlined_call_operand.vmem [shape: bf16[3,128,128], index: 6, kind: input, shape index: {}]   ;;  %s2421_s5 = inlined_call_operand.vmem [shape: f32[1,128], index: 5, kind: input, shape index: {}]   ;;  %s2422_s3 = inlined_call_operand.vmem [shape: bf16[16,128], index: 3, kind: input, shape index: {}]   ;;  %s2423_s7 = inlined_call_operand.vmem [shape: f32[3,1,128], index: 7, kind: input, shape index: {}]   ;;  %s2424_s0 = inlined_call_operand.vmem [shape: bf16[16,16], index: 0, kind: input, shape index: {}]   ;;  %s2425_s9 = inlined_call_operand.vmem [shape: f32[3,1,128], index: 9, kind: input, shape index: {}]   ;;  %s2426_s14 = inlined_call_operand.vmem [shape: bf16[4,128,128], index: 14, kind: input, shape index: {}]   ;;  %s2427_s8 = inlined_call_operand.vmem [shape: f32[3,1,128], index: 8, kind: input, shape index: {}]   ;;  %s2428_s10 = inlined_call_operand.vmem [shape: bf16[128,128], index: 10, kind: input, shape index: {}]   ;;  %s2429_s2 = inlined_call_operand.vmem [shape: bf16[8,16], index: 2, kind: input, shape index: {}]   ;;  %s2430_s1 = inlined_call_operand.vmem [shape: bf16[16,16], index: 1, kind: input, shape index: {}]   ;;  %s2431_s11 = inlined_call_operand.vmem [shape: f32[1,128], index: 11, kind: input, shape index: {}]   ;;  %s2432_s13 = inlined_call_operand.vmem [shape: f32[1,128], index: 13, kind: input, shape index: {}]   ;;  %s2433_s12 = inlined_call_operand.vmem [shape: f32[1,128], index: 12, kind: input, shape index: {}]   ;;  %s2434_s15 = inlined_call_operand.vmem [shape: f32[1,128], index: 15, kind: input, shape index: {}]   ;;  %s2435_s17 = inlined_call_operand.vmem [shape: f32[1,128], index: 17, kind: input, shape index: {}]   ;;  %s2436_s16 = inlined_call_operand.vmem [shape: bf16[128,128], index: 16, kind: input, shape index: {}]   ;;  %s2437_s18 = inlined_call_operand.vmem [shape: bf16[128,128], index: 18, kind: input, shape index: {}]   ;;  %s2438_s19 = inlined_call_operand.vmem [shape: f32[1,128], index: 19, kind: input, shape index: {}]   ;;  %s2439_s20 = inlined_call_operand.vmem [shape: f32[8,128], index: 20, kind: output, shape index: {}]  }
   0x1   :  { %2443 = sst [smem:[#allocation2_spill]] %s2419_s4  ;;  %v2067_v26 = vld [vmem:[%s2424_s0] sm:$0xff]  ;;  %v1811_v61 = vld [vmem:[%s2426_s14 + $0x38] sm:$0xff]  ;;  %v1810_v62 = vld [vmem:[%s2426_s14 + $0x30] sm:$0xff] }
   0x2   :  { %2444 = sst [smem:[#allocation3_spill]] %s2420_s6 }
   0x3   :  { %2445 = sst [smem:[#allocation4_spill]] %s2421_s5 }
   0x4   :  { %2446 = sst [smem:[#allocation5_spill]] %s2422_s3 }
   0x5   :  { %2447 = sst [smem:[#allocation6_spill]] %s2423_s7 }
   0x6   :  { %s2448_s23 = sld [smem:[#allocation2_spill]] }
   0x7   :  { %s2449_s26 = sld [smem:[#allocation3_spill]] }
   0x8   :  { %s2450_s24 = sld [smem:[#allocation5_spill]] }
   0x9   :  { %s2451_s30 = sld [smem:[#allocation4_spill]] }
   0xa   :  { %s2452_s25 = sld [smem:[#allocation6_spill]] }
   0xc   :  { %v1795_v0 = vld [vmem:[%s2448_s23 + $0x38] sm:$0xff]  ;;  %v1794_v1 = vld [vmem:[%s2448_s23 + $0x30] sm:$0xff]  ;;  %v1793_v4 = vld [vmem:[%s2448_s23 + $0x28] sm:$0xff] }
   0xd   :  { %147 = vmatpush.bf16.msra.mxu0 %v1795_v0  ;;  %v1803_v2 = vld [vmem:[%s2449_s26 + $0x38] sm:$0xff]  ;;  %v1802_v3 = vld [vmem:[%s2449_s26 + $0x30] sm:$0xff]  ;;  %v1801_v5 = vld [vmem:[%s2449_s26 + $0x28] sm:$0xff] }
   0xe   :  { %229 = vmatpush.bf16.msra.mxu1 %v1803_v2  ;;  %v1792_v6 = vld [vmem:[%s2448_s23 + $0x20] sm:$0xff]  ;;  %v1791_v8 = vld [vmem:[%s2448_s23 + $0x18] sm:$0xff]  ;;  %v1790_v10 = vld [vmem:[%s2448_s23 + $0x10] sm:$0xff] }
   0xf   :  { %v1800_v7 = vld [vmem:[%s2449_s26 + $0x20] sm:$0xff]  ;;  %v1799_v9 = vld [vmem:[%s2449_s26 + $0x18] sm:$0xff]  ;;  %v1789_v11 = vld [vmem:[%s2448_s23 + $0x8] sm:$0xff] }
  0x10   :  { %v1788_v12 = vld [vmem:[%s2448_s23] sm:$0xff]  ;;  %v1798_v14 = vld [vmem:[%s2449_s26 + $0x10] sm:$0xff]  ;;  %v1797_v15 = vld [vmem:[%s2449_s26 + $0x8] sm:$0xff] }
  0x11   :  { %148 = vmatpush.bf16.msra.mxu0 %v1794_v1  ;;  %v1787_v13 = vld [vmem:[%s2450_s24] sm:$0xff]  ;;  %v1819_v28 = vld [vmem:[%s2449_s26 + $0x78] sm:$0xff]  ;;  %v1818_v30 = vld [vmem:[%s2449_s26 + $0x70] sm:$0xff] }
  0x12   :  { %230 = vmatpush.bf16.msra.mxu1 %v1802_v3  ;;  %v1796_v16 = vld [vmem:[%s2449_s26] sm:$0xff]  ;;  %v1817_v33 = vld [vmem:[%s2449_s26 + $0x68] sm:$0xff]  ;;  %v1815_v43 = vld [vmem:[%s2449_s26 + $0x58] sm:$0xff] }
  0x13   :  { %v1876_v18 = vld [vmem:[%s2451_s30] ss:$0 sm:$0xff]  ;;  %v1814_v48 = vld [vmem:[%s2449_s26 + $0x50] sm:$0xff]  ;;  %v1813_v53 = vld [vmem:[%s2449_s26 + $0x48] sm:$0xff] }
  0x14   :  { %v1877_v29 = vld [vmem:[%s2452_s25] ss:$0 sm:$0xff]  ;;  %v1809_v2 = vld [vmem:[%s2426_s14 + $0x28] sm:$0xff] }
  0x15   :  { %149 = vmatpush.bf16.msra.mxu0 %v1793_v4  ;;  %v1816_v38 = vld [vmem:[%s2449_s26 + $0x60] sm:$0xff] }
  0x16   :  { %231 = vmatpush.bf16.msra.mxu1 %v1801_v5  ;;  %v1812_v56 = vld [vmem:[%s2449_s26 + $0x40] sm:$0xff] }
  0x17   :  { %v1808_v5 = vld [vmem:[%s2426_s14 + $0x20] sm:$0xff] }
  0x19   :  { %150 = vmatpush.bf16.msra.mxu0 %v1792_v6  ;;  %v178_v6 = vld [vmem:[%s2427_s8] sm:$0x1] }
  0x1a   :  { %232 = vmatpush.bf16.msra.mxu1 %v1800_v7 }
  0x1d   :  { %151 = vmatpush.bf16.msra.mxu0 %v1791_v8 }
  0x1e   :  { %233 = vmatpush.bf16.msra.mxu1 %v1799_v9  ;;  %v1807_v9 = vld [vmem:[%s2426_s14 + $0x18] sm:$0xff] }
  0x21   :  { %152 = vmatpush.bf16.msra.mxu0 %v1790_v10 }
  0x22   :  { %234 = vmatpush.bf16.msra.mxu1 %v1798_v14  ;;  %v1878_v14 = vld [vmem:[%s2425_s9] ss:$0 sm:$0xff] }
  0x25   :  { %153 = vmatpush.bf16.msra.mxu0 %v1789_v11 }
  0x26   :  { %235 = vmatpush.bf16.msra.mxu1 %v1797_v15  ;;  %v1806_v15 = vld [vmem:[%s2426_s14 + $0x10] sm:$0xff] }
  0x29   :  { %154 = vmatpush.bf16.msra.mxu0 %v1788_v12 }
  0x2a   :  { %236 = vmatpush.bf16.msra.mxu1 %v1796_v16 }
  0x2c   :  { %155 = vmatmul.bf16.vlgmr.msra.gmra.mxu0 %v1787_v13 }
  0x2e   :  { %644 = vmatpush.bf16.msrb.mxu1 %v1811_v61 }
  0x32   :  { %645 = vmatpush.bf16.msrb.mxu1 %v1810_v62 }
  0x36   :  { %646 = vmatpush.bf16.msrb.mxu1 %v1809_v2 }
  0x3a   :  { %647 = vmatpush.bf16.msrb.mxu1 %v1808_v5 }
  0x3e   :  { %648 = vmatpush.bf16.msrb.mxu1 %v1807_v9 }
  0x42   :  { %649 = vmatpush.bf16.msrb.mxu1 %v1806_v15 }
  0xa9   :  { %v156_v17 = vpop.f32.mrf.mxu0 }
  0xaa   :  { %v2055_v20 = vadd.f32 %v1876_v18, %v156_v17 }
  0xb1   :  { %v158_v19 = vpop.f32.mrf.mxu0 }
  0xb2   :  { %v2057_v21 = vadd.f32 %v1876_v18, %v158_v19 }
  0xb4   :  { %v2061_v22 = vpack.c.bf16 %v2057_v21, %v2055_v20 }
  0xb6   :  { %237 = vmatmul.bf16.vlgmr.msra.gmra.mxu1 %v2061_v22 }
 0x133   :  { %v238_v23 = vpop.f32.mrf.mxu1 }
 0x13b   :  { %v240_v24 = vpop.f32.mrf.mxu1 }
 0x13c   :  { %v243_v25 = vpack.c.bf16 %v240_v24, %v238_v23  ;;  %v1805_v23 = vld [vmem:[%s2426_s14 + $0x8] sm:$0xff] }
 0x13d   :  { %650 = vmatpush.bf16.msrb.mxu1 %v1805_v23 }
 0x13e   :  { %263 = vmatpush.bf16.msra.mxu2 %v243_v25 }
 0x141   :  { %1399 = vmatmul.msk.bf16.vlgmr.msra.gmra.mxu2 %vm252_vm0, %v2067_v26 }
 0x142   :  { %423 = vmatpush.bf16.msrb.mxu2 %v1819_v28 }
 0x146   :  { %424 = vmatpush.bf16.msrb.mxu2 %v1818_v30 }
 0x14a   :  { %425 = vmatpush.bf16.msrb.mxu2 %v1817_v33  ;;  %v1850_v33 = vld [vmem:[%s2428_s10 + $0x30] sm:$0xff] }
 0x14e   :  { %426 = vmatpush.bf16.msrb.mxu2 %v1816_v38  ;;  %v1845_v38 = vld [vmem:[%s2428_s10 + $0x8] sm:$0xff] }
 0x152   :  { %427 = vmatpush.bf16.msrb.mxu2 %v1815_v43 }
 0x156   :  { %428 = vmatpush.bf16.msrb.mxu2 %v1814_v48  ;;  %v1833_v48 = vld [vmem:[%s2449_s26 + $0xa8] sm:$0xff] }
 0x15a   :  { %429 = vmatpush.bf16.msrb.mxu2 %v1813_v53 }
 0x15e   :  { %430 = vmatpush.bf16.msrb.mxu2 %v1812_v56 }
 0x1c4   :  { %v265_v27 = vpop.f32.mrf.mxu2 }
 0x1c5   :  { %v2080_v31 = vadd.f32 %v1877_v29, %v265_v27 }
 0x1c7   :  { %v278_v35 = vmul.f32 %v2080_v31, %v2080_v31 }
 0x1cc   :  { %v267_v32 = vpop.f32.mrf.mxu2 }
 0x1cd   :  { %v2085_v34 = vadd.f32 %v1877_v29, %v267_v32  ;;  %v1804_v29 = vld [vmem:[%s2426_s14] sm:$0xff] }
 0x1ce   :  { %v2154_v32 = vld [vmem:[%s2429_s2] sm:$0xf]  ;;  %651 = vmatpush.bf16.msrb.mxu1 %v1804_v29 }
 0x1cf   :  { %v270_v36 = vadd.f32 %v2085_v34, %v2080_v31  ;;  %v279_v37 = vmul.f32 %v2085_v34, %v2085_v34 }
 0x1d1   :  { %v271_v39 = vrot.slane %v270_v36, 4  ;;  %v280_v40 = vadd.f32 %v279_v37, %v278_v35  ;;  %v1848_v35 = vld [vmem:[%s2428_s10 + $0x20] sm:$0xff]  ;;  %v1846_v37 = vld [vmem:[%s2428_s10 + $0x10] sm:$0xff] }
 0x1d3   :  { %v272_v41 = vadd.f32 %v271_v39, %v270_v36  ;;  %v281_v42 = vrot.slane %v280_v40, 4  ;;  %v1847_v36 = vld [vmem:[%s2428_s10 + $0x18] sm:$0xff]  ;;  %v1844_v39 = vld [vmem:[%s2428_s10] sm:$0xff] }
 0x1d5   :  { %v273_v44 = vrot.slane %v272_v41, 2  ;;  %v282_v45 = vadd.f32 %v281_v42, %v280_v40  ;;  %v1835_v40 = vld [vmem:[%s2449_s26 + $0xb8] sm:$0xff] }
 0x1d6   :  { %728 = vmatpush.bf16.msra.mxu2 %v1835_v40 }
 0x1d7   :  { %v274_v46 = vadd.f32 %v273_v44, %v272_v41  ;;  %v283_v47 = vrot.slane %v282_v45, 2 }
 0x1d9   :  { %v275_v49 = vrot.slane %v274_v46, 1  ;;  %v284_v50 = vadd.f32 %v283_v47, %v282_v45  ;;  %v1834_v47 = vld [vmem:[%s2449_s26 + $0xb0] sm:$0xff] }
 0x1da   :  { %729 = vmatpush.bf16.msra.mxu2 %v1834_v47 }
 0x1db   :  { %v276_v51 = vadd.f32 %v275_v49, %v274_v46  ;;  %v285_v52 = vrot.slane %v284_v50, 1  ;;  %v1832_v49 = vld [vmem:[%s2449_s26 + $0xa0] sm:$0xff] }
 0x1dd   :  { %v277_v54 = vmul.f32 0.0625, %v276_v51  ;;  %v286_v55 = vadd.f32 %v285_v52, %v284_v50  ;;  %v1831_v50 = vld [vmem:[%s2449_s26 + $0x98] sm:$0xff]  ;;  %v1829_v51 = vld [vmem:[%s2449_s26 + $0x88] sm:$0xff]  ;;  %v1828_v52 = vld [vmem:[%s2449_s26 + $0x80] sm:$0xff] }
 0x1de   :  { %730 = vmatpush.bf16.msra.mxu2 %v1833_v48 }
 0x1df   :  { %v287_v57 = vmul.f32 0.0625, %v286_v55  ;;  %v288_v58 = vmul.f32 %v277_v54, %v277_v54  ;;  %v303_v11 = vsub.f32 %v2085_v34, %v277_v54  ;;  %v302_v13 = vsub.f32 %v2080_v31, %v277_v54  ;;  %v1851_v31 = vld [vmem:[%s2428_s10 + $0x38] sm:$0xff]  ;;  %v1849_v34 = vld [vmem:[%s2428_s10 + $0x28] sm:$0xff] }
 0x1e0   :  { %969 = vmatpush.bf16.msra.mxu1 %v1851_v31  ;;  %v1418_v31 = vld [vmem:[%s2427_s8 + $0x1] sm:$0x1] }
 0x1e1   :  { %v289_v59 = vsub.f32 %v287_v57, %v288_v58  ;;  %v1879_v57 = vld [vmem:[%s2452_s25 + $0x1] ss:$0 sm:$0xff] }
 0x1e2   :  { %731 = vmatpush.bf16.msra.mxu2 %v1832_v49  ;;  %v1824_v49 = vld [vmem:[%s2426_s14 + $0x60] sm:$0xff] }
 0x1e3   :  { %v290_v60 = vadd.f32 1e-05, %v289_v59 }
 0x1e4   :  { %970 = vmatpush.bf16.msra.mxu1 %v1850_v33 }
 0x1e5   :  { %1888 = vrsqrt.f32 %v290_v60  ;;  %vm297_vm2 = vweird.f32 %v290_v60 }
 0x1e6   :  { %732 = vmatpush.bf16.msra.mxu2 %v1831_v50 }
 0x1e8   :  { %971 = vmatpush.bf16.msra.mxu1 %v1849_v34  ;;  %v1827_v34 = vld [vmem:[%s2426_s14 + $0x78] sm:$0xff] }
 0x1e9   :  { %583 = vmatpush.bf16.msrb.mxu0 %v1827_v34 }
 0x1eb   :  { %v1889_v63 = vpop.eup %1888 }
 0x1ec   :  { %v292_v0 = vmul.f32 %v1889_v63, %v290_v60  ;;  %vm298_vm1 = vweird.f32 %v1889_v63  ;;  %972 = vmatpush.bf16.msra.mxu1 %v1848_v35 }
 0x1ed   :  { %vm299_vm3 = vmor %vm297_vm2, %vm298_vm1 }
 0x1ee   :  { %v293_v1 = vmul.f32 %v1889_v63, %v292_v0 }
 0x1f0   :  { %v294_v3 = vmul.f32 0.5, %v293_v1  ;;  %973 = vmatpush.bf16.msra.mxu1 %v1847_v36 }
 0x1f2   :  { %v295_v4 = vsub.f32 1.5, %v294_v3 }
 0x1f4   :  { %v296_v7 = vmul.f32 %v1889_v63, %v295_v4  ;;  %974 = vmatpush.bf16.msra.mxu1 %v1846_v37  ;;  %v1826_v37 = vld [vmem:[%s2426_s14 + $0x70] sm:$0xff] }
 0x1f5   :  { %584 = vmatpush.bf16.msrb.mxu0 %v1826_v37 }
 0x1f6   :  { %v300_v8 = vsel %vm299_vm3, %v1889_v63, %v296_v7 }
 0x1f7   :  { %v301_v10 = vmul.f32 %v300_v8, %v178_v6 }
 0x1f8   :  { %975 = vmatpush.bf16.msra.mxu1 %v1845_v38 }
 0x1f9   :  { %v305_v12 = vperm.slane %v301_v10, 0 }
 0x1fb   :  { %v308_v16 = vmul.f32 %v305_v12, %v303_v11  ;;  %v307_v17 = vmul.f32 %v305_v12, %v302_v13 }
 0x1fc   :  { %976 = vmatpush.bf16.msra.mxu1 %v1844_v39 }
 0x1fd   :  { %v312_v18 = vadd.f32 %v1878_v14, %v307_v17  ;;  %v313_v19 = vadd.f32 %v1878_v14, %v308_v16 }
 0x1ff   :  { %v314_v24 = vmax.f32 %v312_v18, 0.0  ;;  %v315_v25 = vmax.f32 %v313_v19, 0.0 }
 0x201   :  { %v2138_v27 = vadd.f32 %v314_v24, %v2055_v20  ;;  %v2141_v28 = vadd.f32 %v315_v25, %v2057_v21 }
 0x203   :  { %v318_v30 = vpack.c.bf16 %v2141_v28, %v2138_v27 }
 0x205   :  { %329 = vmatpush.bf16.msra.mxu3 %v318_v30  ;;  %431 = vmatmul.bf16.vlgmr.msrb.gmra.mxu2 %v318_v30 }
 0x208   :  { %1400 = vmatmul.msk.bf16.vlgmr.msra.gmra.mxu3 %vm252_vm0, %v2154_v32 }
 0x288   :  { %v432_v41 = vpop.f32.mrf.mxu2 }
 0x28b   :  { %v331_v42 = vpop.f32.mrf.mxu3 }
 0x28c   :  { %v335_v43 = vpack.c.bf16 %v331_v42, %v331_v42 }
 0x28e   :  { %652 = vmatmul.bf16.vlgmr.msrb.gmra.mxu1 %v335_v43 }
 0x290   :  { %v434_v44 = vpop.f32.mrf.mxu2 }
 0x291   :  { %v437_v45 = vpack.c.bf16 %v434_v44, %v432_v41  ;;  %v1880_v41 = vld [vmem:[%s2425_s9 + $0x1] ss:$0 sm:$0xff]  ;;  %v1825_v44 = vld [vmem:[%s2426_s14 + $0x68] sm:$0xff] }
 0x292   :  { %585 = vmatpush.bf16.msrb.mxu0 %v1825_v44 }
 0x293   :  { %448 = vmatpush.bf16.msrb.mxu3 %v437_v45  ;;  %v333_v46 = vpop.f32.mrf.mxu3 }
 0x296   :  { %1452 = vmatmul.msk.bf16.vlgmr.msrb.gmra.mxu3 %vm252_vm0, %v2067_v26  ;;  %586 = vmatpush.bf16.msrb.mxu0 %v1824_v49 }
 0x29e   :  { %977 = vmatmul.bf16.vlgmr.msra.gmra.mxu1 %v2061_v22  ;;  %v1830_v22 = vld [vmem:[%s2449_s26 + $0x90] sm:$0xff] }
 0x29f   :  { %733 = vmatpush.bf16.msra.mxu2 %v1830_v22 }
 0x2a3   :  { %734 = vmatpush.bf16.msra.mxu2 %v1829_v51 }
 0x2a7   :  { %735 = vmatpush.bf16.msra.mxu2 %v1828_v52  ;;  %v1823_v52 = vld [vmem:[%s2426_s14 + $0x58] sm:$0xff] }
 0x2a8   :  { %587 = vmatpush.bf16.msrb.mxu0 %v1823_v52 }
 0x30b   :  { %v2206_v53 = vpop.f32.mrf.mxu1 }
 0x313   :  { %v655_v54 = vpop.f32.mrf.mxu1 }
 0x314   :  { %v1822_v54 = vld [vmem:[%s2426_s14 + $0x50] sm:$0xff] }
 0x315   :  { %588 = vmatpush.bf16.msrb.mxu0 %v1822_v54 }
 0x319   :  { %v450_v55 = vpop.f32.mrf.mxu3 }
 0x31a   :  { %v451_v58 = vadd.f32 %v1879_v57, %v450_v55  ;;  %v1820_v55 = vld [vmem:[%s2426_s14 + $0x40] sm:$0xff] }
 0x31b   :  { %v978_v56 = vpop.f32.mrf.mxu1 }
 0x31c   :  { %v463_v62 = vmul.f32 %v451_v58, %v451_v58 }
 0x321   :  { %v452_v59 = vpop.f32.mrf.mxu3 }
 0x322   :  { %v453_v60 = vadd.f32 %v1879_v57, %v452_v59 }
 0x323   :  { %v980_v61 = vpop.f32.mrf.mxu1 }
 0x324   :  { %v455_v63 = vadd.f32 %v453_v60, %v451_v58  ;;  %v464_v0 = vmul.f32 %v453_v60, %v453_v60  ;;  %v983_v1 = vpack.c.bf16 %v980_v61, %v978_v56 }
 0x326   :  { %v456_v2 = vrot.slane %v455_v63, 4  ;;  %v465_v3 = vadd.f32 %v464_v0, %v463_v62  ;;  %1002 = vmatpush.bf16.msrb.mxu2 %v983_v1 }
 0x328   :  { %v457_v4 = vadd.f32 %v456_v2, %v455_v63  ;;  %v466_v5 = vrot.slane %v465_v3, 4  ;;  %v1881_v63 = vld [vmem:[%s2431_s11] ss:$0 sm:$0xff] }
 0x32a   :  { %v458_v6 = vrot.slane %v457_v4, 2  ;;  %v467_v7 = vadd.f32 %v466_v5, %v465_v3 }
 0x32c   :  { %v459_v8 = vadd.f32 %v458_v6, %v457_v4  ;;  %v468_v9 = vrot.slane %v467_v7, 2 }
 0x32e   :  { %v460_v10 = vrot.slane %v459_v8, 1  ;;  %v469_v11 = vadd.f32 %v468_v9, %v467_v7 }
 0x330   :  { %v461_v12 = vadd.f32 %v460_v10, %v459_v8  ;;  %v470_v13 = vrot.slane %v469_v11, 1 }
 0x332   :  { %v462_v14 = vmul.f32 0.0625, %v461_v12  ;;  %v471_v15 = vadd.f32 %v470_v13, %v469_v11 }
 0x334   :  { %v472_v16 = vmul.f32 0.0625, %v471_v15  ;;  %v473_v17 = vmul.f32 %v462_v14, %v462_v14  ;;  %v487_v38 = vsub.f32 %v451_v58, %v462_v14  ;;  %v488_v39 = vsub.f32 %v453_v60, %v462_v14 }
 0x336   :  { %v474_v18 = vsub.f32 %v472_v16, %v473_v17 }
 0x338   :  { %v475_v19 = vadd.f32 1e-05, %v474_v18 }
 0x33a   :  { %1890 = vrsqrt.f32 %v475_v19  ;;  %vm482_vm5 = vweird.f32 %v475_v19 }
 0x340   :  { %v1891_v23 = vpop.eup %1890 }
 0x341   :  { %v477_v24 = vmul.f32 %v1891_v23, %v475_v19  ;;  %vm483_vm4 = vweird.f32 %v1891_v23 }
 0x342   :  { %vm484_vm6 = vmor %vm482_vm5, %vm483_vm4 }
 0x343   :  { %v478_v25 = vmul.f32 %v1891_v23, %v477_v24 }
 0x345   :  { %v479_v29 = vmul.f32 0.5, %v478_v25 }
 0x347   :  { %v480_v30 = vsub.f32 1.5, %v479_v29 }
 0x349   :  { %v481_v33 = vmul.f32 %v1891_v23, %v480_v30 }
 0x34b   :  { %v485_v35 = vsel %vm484_vm6, %v1891_v23, %v481_v33 }
 0x34c   :  { %v486_v36 = vmul.f32 %v1418_v31, %v485_v35  ;;  %v1883_v31 = vld [vmem:[%s2452_s25 + $0x2] ss:$0 sm:$0xff] }
 0x34e   :  { %v490_v40 = vperm.slane %v486_v36, 0 }
 0x350   :  { %v492_v42 = vmul.f32 %v490_v40, %v487_v38  ;;  %v493_v43 = vmul.f32 %v490_v40, %v488_v39 }
 0x352   :  { %v498_v45 = vadd.f32 %v1880_v41, %v493_v43  ;;  %v497_v46 = vadd.f32 %v1880_v41, %v492_v42 }
 0x354   :  { %v500_v47 = vmax.f32 %v498_v45, 0.0  ;;  %v499_v48 = vmax.f32 %v497_v46, 0.0 }
 0x356   :  { %v2230_v50 = vadd.f32 %v499_v48, %v2138_v27  ;;  %v2233_v22 = vadd.f32 %v500_v47, %v2141_v28  ;;  %v1821_v27 = vld [vmem:[%s2426_s14 + $0x48] sm:$0xff]  ;;  %v1786_v28 = vld [vmem:[%s2430_s1] sm:$0xff] }
 0x357   :  { %589 = vmatpush.bf16.msrb.mxu0 %v1821_v27 }
 0x358   :  { %v503_v51 = vpack.c.bf16 %v2233_v22, %v2230_v50 }
 0x35a   :  { %511 = vmatpush.bf16.msra.mxu3 %v503_v51  ;;  %736 = vmatmul.bf16.vlgmr.msra.gmra.mxu2 %v503_v51 }
 0x35b   :  { %590 = vmatpush.bf16.msrb.mxu0 %v1820_v55 }
 0x35d   :  { %1453 = vmatmul.msk.bf16.vlgmr.msra.gmra.mxu3 %vm252_vm0, %v2154_v32 }
 0x36a   :  { %1671 = vmatmul.msk.bf16.vlgmr.msrb.gmra.mxu2 %vm252_vm0, %v1786_v28 }
 0x3dd   :  { %v737_v56 = vpop.f32.mrf.mxu2 }
 0x3e0   :  { %v513_v57 = vpop.f32.mrf.mxu3 }
 0x3e1   :  { %v517_v58 = vpack.c.bf16 %v513_v57, %v513_v57 }
 0x3e3   :  { %591 = vmatmul.bf16.vlgmr.msrb.gmra.mxu0 %v517_v58 }
 0x3e5   :  { %v739_v59 = vpop.f32.mrf.mxu2 }
 0x3e6   :  { %v742_v60 = vpack.c.bf16 %v739_v59, %v737_v56 }
 0x3e8   :  { %753 = vmatpush.bf16.msrb.mxu3 %v742_v60  ;;  %v515_v61 = vpop.f32.mrf.mxu3 }
 0x3eb   :  { %1585 = vmatmul.msk.bf16.vlgmr.msrb.gmra.mxu3 %vm252_vm0, %v2067_v26 }
 0x3ed   :  { %v1004_v62 = vpop.f32.mrf.mxu2 }
 0x3ee   :  { %v2260_v1 = vadd.f32 %v1881_v63, %v1004_v62 }
 0x3f0   :  { %v1017_v3 = vmul.f32 %v2260_v1, %v2260_v1 }
 0x3f5   :  { %v1006_v0 = vpop.f32.mrf.mxu2 }
 0x3f6   :  { %v2262_v2 = vadd.f32 %v1881_v63, %v1006_v0  ;;  %v919_v0 = vld [vmem:[%s2433_s12] sm:$0x1] }
 0x3f8   :  { %v1009_v4 = vadd.f32 %v2262_v2, %v2260_v1  ;;  %v1018_v5 = vmul.f32 %v2262_v2, %v2262_v2 }
 0x3fa   :  { %v1010_v26 = vrot.slane %v1009_v4, 4  ;;  %v1019_v6 = vadd.f32 %v1018_v5, %v1017_v3 }
 0x3fc   :  { %v1011_v7 = vadd.f32 %v1010_v26, %v1009_v4  ;;  %v1020_v8 = vrot.slane %v1019_v6, 4 }
 0x3fe   :  { %v1012_v9 = vrot.slane %v1011_v7, 2  ;;  %v1021_v10 = vadd.f32 %v1020_v8, %v1019_v6 }
 0x400   :  { %v1013_v11 = vadd.f32 %v1012_v9, %v1011_v7  ;;  %v1022_v12 = vrot.slane %v1021_v10, 2 }
 0x402   :  { %v1014_v13 = vrot.slane %v1013_v11, 1  ;;  %v1023_v14 = vadd.f32 %v1022_v12, %v1021_v10 }
 0x404   :  { %v1015_v16 = vadd.f32 %v1014_v13, %v1013_v11  ;;  %v1024_v17 = vrot.slane %v1023_v14, 1 }
 0x406   :  { %v1016_v18 = vmul.f32 0.0625, %v1015_v16  ;;  %v1025_v19 = vadd.f32 %v1024_v17, %v1023_v14  ;;  %v1882_v14 = vld [vmem:[%s2432_s13] ss:$0 sm:$0xff]  ;;  %v1551_v16 = vld [vmem:[%s2427_s8 + $0x2] sm:$0x1] }
 0x408   :  { %v1026_v24 = vmul.f32 0.0625, %v1025_v19  ;;  %v1027_v25 = vmul.f32 %v1016_v18, %v1016_v18  ;;  %v1041_v7 = vsub.f32 %v2260_v1, %v1016_v18  ;;  %v1042_v8 = vsub.f32 %v2262_v2, %v1016_v18 }
 0x40a   :  { %v1028_v29 = vsub.f32 %v1026_v24, %v1027_v25 }
 0x40c   :  { %v1029_v33 = vadd.f32 1e-05, %v1028_v29 }
 0x40e   :  { %1892 = vrsqrt.f32 %v1029_v33  ;;  %vm1036_vm7 = vweird.f32 %v1029_v33 }
 0x414   :  { %v1893_v42 = vpop.eup %1892 }
 0x415   :  { %v1031_v45 = vmul.f32 %v1893_v42, %v1029_v33  ;;  %vm1037_vm8 = vweird.f32 %v1893_v42  ;;  %v1842_v33 = vld [vmem:[%s2426_s14 + $0xb0] sm:$0xff] }
 0x416   :  { %vm1038_vm9 = vmor %vm1036_vm7, %vm1037_vm8 }
 0x417   :  { %v1032_v51 = vmul.f32 %v1893_v42, %v1031_v45 }
 0x419   :  { %v1033_v55 = vmul.f32 0.5, %v1032_v51 }
 0x41b   :  { %v1034_v60 = vsub.f32 1.5, %v1033_v55  ;;  %v1852_v55 = vld [vmem:[%s2426_s14 + $0xc0] sm:$0xff] }
 0x41d   :  { %v1035_v63 = vmul.f32 %v1893_v42, %v1034_v60 }
 0x41f   :  { %v1039_v3 = vsel %vm1038_vm9, %v1893_v42, %v1035_v63  ;;  %v1866_v63 = vld [vmem:[%s2436_s16 + $0x30] sm:$0xff] }
 0x420   :  { %v1040_v5 = vmul.f32 %v1039_v3, %v919_v0  ;;  %v1865_v0 = vld [vmem:[%s2436_s16 + $0x28] sm:$0xff]  ;;  %v1864_v3 = vld [vmem:[%s2436_s16 + $0x20] sm:$0xff] }
 0x422   :  { %v1044_v9 = vperm.slane %v1040_v5, 0  ;;  %v1862_v5 = vld [vmem:[%s2436_s16 + $0x10] sm:$0xff] }
 0x424   :  { %v1046_v12 = vmul.f32 %v1044_v9, %v1041_v7  ;;  %v1047_v13 = vmul.f32 %v1044_v9, %v1042_v8  ;;  %v1875_v7 = vld [vmem:[%s2437_s18 + $0x38] sm:$0xff]  ;;  %v1874_v9 = vld [vmem:[%s2437_s18 + $0x30] sm:$0xff] }
 0x426   :  { %v1052_v2 = vadd.f32 %v1882_v14, %v1047_v13  ;;  %v1051_v18 = vadd.f32 %v1882_v14, %v1046_v12  ;;  %v1872_v12 = vld [vmem:[%s2437_s18 + $0x20] sm:$0xff]  ;;  %v1871_v13 = vld [vmem:[%s2437_s18 + $0x18] sm:$0xff]  ;;  %v1870_v14 = vld [vmem:[%s2437_s18 + $0x10] sm:$0xff] }
 0x460   :  { %v2270_v15 = vpop.f32.mrf.mxu0 }
 0x468   :  { %v594_v23 = vpop.f32.mrf.mxu0 }
 0x469   :  { %v1843_v23 = vld [vmem:[%s2426_s14 + $0xb8] sm:$0xff] }
 0x46a   :  { %888 = vmatpush.bf16.msra.mxu0 %v1843_v23 }
 0x46e   :  { %v755_v30 = vpop.f32.mrf.mxu3  ;;  %889 = vmatpush.bf16.msra.mxu0 %v1842_v33 }
 0x46f   :  { %v2275_v34 = vadd.f32 %v1883_v31, %v755_v30  ;;  %v1884_v30 = vld [vmem:[%s2425_s9 + $0x2] ss:$0 sm:$0xff] }
 0x471   :  { %v768_v37 = vmul.f32 %v2275_v34, %v2275_v34 }
 0x476   :  { %v757_v35 = vpop.f32.mrf.mxu3 }
 0x477   :  { %v2277_v36 = vadd.f32 %v1883_v31, %v757_v35  ;;  %v1859_v31 = vld [vmem:[%s2426_s14 + $0xf8] sm:$0xff] }
 0x478   :  { %1137 = vmatpush.bf16.msra.mxu2 %v1859_v31 }
 0x479   :  { %v760_v38 = vadd.f32 %v2277_v36, %v2275_v34  ;;  %v769_v39 = vmul.f32 %v2277_v36, %v2277_v36 }
 0x47b   :  { %v761_v40 = vrot.slane %v760_v38, 4  ;;  %v770_v41 = vadd.f32 %v769_v39, %v768_v37 }
 0x47d   :  { %v762_v43 = vadd.f32 %v761_v40, %v760_v38  ;;  %v771_v44 = vrot.slane %v770_v41, 4  ;;  %v1053_v38 = vmax.f32 %v1051_v18, 0.0 }
 0x47f   :  { %v763_v46 = vrot.slane %v762_v43, 2  ;;  %v772_v47 = vadd.f32 %v771_v44, %v770_v41  ;;  %v1841_v41 = vld [vmem:[%s2426_s14 + $0xa8] sm:$0xff]  ;;  %v1055_v45 = vadd.f32 %v1053_v38, %v2055_v20  ;;  %v1839_v20 = vld [vmem:[%s2426_s14 + $0x98] sm:$0xff] }
 0x480   :  { %v1857_v44 = vld [vmem:[%s2426_s14 + $0xe8] sm:$0xff]  ;;  %890 = vmatpush.bf16.msra.mxu0 %v1841_v41 }
 0x481   :  { %v764_v48 = vadd.f32 %v763_v46, %v762_v43  ;;  %v773_v49 = vrot.slane %v772_v47, 2 }
 0x483   :  { %v765_v52 = vrot.slane %v764_v48, 1  ;;  %v774_v54 = vadd.f32 %v773_v49, %v772_v47  ;;  %v1840_v49 = vld [vmem:[%s2426_s14 + $0xa0] sm:$0xff] }
 0x484   :  { %891 = vmatpush.bf16.msra.mxu0 %v1840_v49 }
 0x485   :  { %v766_v27 = vadd.f32 %v765_v52, %v764_v48  ;;  %v775_v28 = vrot.slane %v774_v54, 1 }
 0x487   :  { %v767_v56 = vmul.f32 0.0625, %v766_v27  ;;  %v776_v57 = vadd.f32 %v775_v28, %v774_v54  ;;  %v1856_v54 = vld [vmem:[%s2426_s14 + $0xe0] sm:$0xff]  ;;  %v1855_v27 = vld [vmem:[%s2426_s14 + $0xd8] sm:$0xff]  ;;  %v1854_v28 = vld [vmem:[%s2426_s14 + $0xd0] sm:$0xff] }
 0x488   :  { %892 = vmatpush.bf16.msra.mxu0 %v1839_v20 }
 0x489   :  { %v777_v58 = vmul.f32 0.0625, %v776_v57  ;;  %v778_v59 = vmul.f32 %v767_v56, %v767_v56  ;;  %v792_v24 = vsub.f32 %v2275_v34, %v767_v56  ;;  %v793_v25 = vsub.f32 %v2277_v36, %v767_v56  ;;  %v1858_v34 = vld [vmem:[%s2426_s14 + $0xf0] sm:$0xff] }
 0x48a   :  { %v1054_v36 = vmax.f32 %v1052_v2, 0.0  ;;  %1138 = vmatpush.bf16.msra.mxu2 %v1858_v34  ;;  %v1887_v34 = vld [vmem:[%s2438_s19] ss:$0 sm:$0xff] }
 0x48b   :  { %v779_v61 = vsub.f32 %v777_v58, %v778_v59 }
 0x48c   :  { %v1056_v46 = vadd.f32 %v1054_v36, %v2057_v21  ;;  %v1838_v21 = vld [vmem:[%s2426_s14 + $0x90] sm:$0xff] }
 0x48d   :  { %v780_v62 = vadd.f32 1e-05, %v779_v61  ;;  %893 = vmatpush.bf16.msra.mxu0 %v1838_v21 }
 0x48e   :  { %1139 = vmatpush.bf16.msra.mxu2 %v1857_v44  ;;  %v1057_v52 = vpack.c.bf16 %v1056_v46, %v1055_v45 }
 0x48f   :  { %1894 = vrsqrt.f32 %v780_v62  ;;  %vm787_vm11 = vweird.f32 %v780_v62 }
 0x492   :  { %1140 = vmatpush.bf16.msra.mxu2 %v1856_v54 }
 0x495   :  { %v1895_v4 = vpop.eup %1894 }
 0x496   :  { %v782_v26 = vmul.f32 %v1895_v4, %v780_v62  ;;  %vm788_vm10 = vweird.f32 %v1895_v4  ;;  %1141 = vmatpush.bf16.msra.mxu2 %v1855_v27  ;;  %v1867_v62 = vld [vmem:[%s2436_s16 + $0x38] sm:$0xff] }
 0x497   :  { %vm789_vm12 = vmor %vm787_vm11, %vm788_vm10 }
 0x498   :  { %v783_v6 = vmul.f32 %v1895_v4, %v782_v26  ;;  %v1861_v26 = vld [vmem:[%s2436_s16 + $0x8] sm:$0xff] }
 0x49a   :  { %v784_v10 = vmul.f32 0.5, %v783_v6  ;;  %1142 = vmatpush.bf16.msra.mxu2 %v1854_v28  ;;  %v1860_v6 = vld [vmem:[%s2436_s16] sm:$0xff] }
 0x49c   :  { %v785_v11 = vsub.f32 1.5, %v784_v10  ;;  %v1873_v10 = vld [vmem:[%s2437_s18 + $0x28] sm:$0xff] }
 0x49e   :  { %v786_v17 = vmul.f32 %v1895_v4, %v785_v11 }
 0x4a0   :  { %v790_v1 = vsel %vm789_vm12, %v1895_v4, %v786_v17  ;;  %v1863_v4 = vld [vmem:[%s2436_s16 + $0x18] sm:$0xff] }
 0x4a1   :  { %v791_v19 = vmul.f32 %v1551_v16, %v790_v1  ;;  %v654_v16 = vadd.f32 %v2206_v53, %v2270_v15  ;;  %v1885_v1 = vld [vmem:[%s2434_s15] ss:$0 sm:$0xff] }
 0x4a2   :  { %v1868_v53 = vld [vmem:[%s2437_s18] sm:$0xff] }
 0x4a3   :  { %v795_v29 = vperm.slane %v791_v19, 0  ;;  %v1886_v15 = vld [vmem:[%s2435_s17] ss:$0 sm:$0xff] }
 0x4a5   :  { %v797_v35 = vmul.f32 %v795_v29, %v792_v24  ;;  %v798_v37 = vmul.f32 %v795_v29, %v793_v25  ;;  %v1869_v29 = vld [vmem:[%s2437_s18 + $0x8] sm:$0xff] }
 0x4a7   :  { %v803_v39 = vadd.f32 %v1884_v30, %v798_v37  ;;  %v802_v40 = vadd.f32 %v1884_v30, %v797_v35 }
 0x4a9   :  { %v805_v42 = vmax.f32 %v803_v39, 0.0  ;;  %v804_v43 = vmax.f32 %v802_v40, 0.0 }
 0x4ab   :  { %v806_v47 = vadd.f32 %v804_v43, %v2230_v50  ;;  %v807_v48 = vadd.f32 %v805_v42, %v2233_v22  ;;  %v1837_v50 = vld [vmem:[%s2426_s14 + $0x88] sm:$0xff]  ;;  %v1836_v22 = vld [vmem:[%s2426_s14 + $0x80] sm:$0xff] }
 0x4ac   :  { %894 = vmatpush.bf16.msra.mxu0 %v1837_v50 }
 0x4ad   :  { %v808_v51 = vpack.c.bf16 %v807_v48, %v806_v47 }
 0x4af   :  { %816 = vmatpush.bf16.msra.mxu3 %v808_v51 }
 0x4b0   :  { %895 = vmatpush.bf16.msra.mxu0 %v1836_v22 }
 0x4b2   :  { %1586 = vmatmul.msk.bf16.vlgmr.msra.gmra.mxu3 %vm252_vm0, %v2154_v32 }
 0x4b3   :  { %1065 = vmatpush.bf16.msrb.mxu3 %v1057_v52 }
 0x4b4   :  { %1309 = vmatpush.bf16.msrb.mxu0 %v1875_v7 }
 0x4b7   :  { %1226 = vmatpush.bf16.msra.mxu3 %v1867_v62 }
 0x4b8   :  { %1310 = vmatpush.bf16.msrb.mxu0 %v1874_v9 }
 0x4bb   :  { %1227 = vmatpush.bf16.msra.mxu3 %v1866_v63 }
 0x4bc   :  { %1311 = vmatpush.bf16.msrb.mxu0 %v1873_v10 }
 0x4bf   :  { %1228 = vmatpush.bf16.msra.mxu3 %v1865_v0 }
 0x4c0   :  { %1312 = vmatpush.bf16.msrb.mxu0 %v1872_v12 }
 0x4c2   :  { %1672 = vmatmul.msk.bf16.vlgmr.msrb.gmra.mxu3 %vm252_vm0, %v2154_v32  ;;  %v1853_v32 = vld [vmem:[%s2426_s14 + $0xc8] sm:$0xff] }
 0x4c3   :  { %1143 = vmatpush.bf16.msra.mxu2 %v1853_v32  ;;  %1229 = vmatpush.bf16.msra.mxu3 %v1864_v3 }
 0x4c4   :  { %1313 = vmatpush.bf16.msrb.mxu0 %v1871_v13 }
 0x4c7   :  { %1144 = vmatpush.bf16.msra.mxu2 %v1852_v55  ;;  %1230 = vmatpush.bf16.msra.mxu3 %v1863_v4 }
 0x4c8   :  { %1314 = vmatpush.bf16.msrb.mxu0 %v1870_v14 }
 0x4cb   :  { %1231 = vmatpush.bf16.msra.mxu3 %v1862_v5 }
 0x4cc   :  { %1315 = vmatpush.bf16.msrb.mxu0 %v1869_v29 }
 0x4cf   :  { %1232 = vmatpush.bf16.msra.mxu3 %v1861_v26 }
 0x4d0   :  { %1316 = vmatpush.bf16.msrb.mxu0 %v1868_v53 }
 0x4d3   :  { %1233 = vmatpush.bf16.msra.mxu3 %v1860_v6 }
 0x535   :  { %v818_v56 = vpop.f32.mrf.mxu3 }
 0x536   :  { %v822_v57 = vpack.c.bf16 %v818_v56, %v818_v56 }
 0x538   :  { %896 = vmatmul.bf16.vlgmr.msra.gmra.mxu0 %v822_v57 }
 0x53d   :  { %v820_v58 = vpop.f32.mrf.mxu3 }
 0x545   :  { %v1067_v59 = vpop.f32.mrf.mxu3 }
 0x546   :  { %v1071_v60 = vpack.c.bf16 %v1067_v59, %v1067_v59 }
 0x548   :  { %1145 = vmatmul.bf16.vlgmr.msra.gmra.mxu2 %v1071_v60 }
 0x54d   :  { %v1069_v61 = vpop.f32.mrf.mxu3 }
 0x5b5   :  { %v897_v8 = vpop.f32.mrf.mxu0 }
 0x5b6   :  { %v901_v17 = vadd.f32 %v897_v8, %v654_v16 }
 0x5bd   :  { %v899_v11 = vpop.f32.mrf.mxu0 }
 0x5cb   :  { %v1146_v19 = vpop.f32.mrf.mxu2 }
 0x5cc   :  { %v1150_v2 = vadd.f32 %v1146_v19, %v901_v17 }
 0x5ce   :  { %v1155_v18 = vadd.f32 %v1885_v1, %v1150_v2 }
 0x5d0   :  { %v1156_v23 = vmax.f32 %v1155_v18, 0.0 }
 0x5d2   :  { %v1157_v24 = vpack.c.bf16 %v1156_v23, %v1156_v23 }
 0x5d3   :  { %v1148_v25 = vpop.f32.mrf.mxu2 }
 0x5d4   :  { %1234 = vmatmul.bf16.vlgmr.msra.gmra.mxu3 %v1157_v24 }
 0x657   :  { %v1235_v30 = vpop.f32.mrf.mxu3 }
 0x658   :  { %v1236_v31 = vadd.f32 %v1886_v15, %v1235_v30 }
 0x65a   :  { %v1239_v33 = vmax.f32 %v1236_v31, 0.0 }
 0x65c   :  { %v1240_v35 = vpack.c.bf16 %v1239_v33, %v1239_v33 }
 0x65e   :  { %1317 = vmatmul.bf16.vlgmr.msrb.gmra.mxu0 %v1240_v35 }
 0x65f   :  { %v1237_v37 = vpop.f32.mrf.mxu3 }
 0x6db   :  { %v1318_v36 = vpop.f32.mrf.mxu0 }
 0x6dc   :  { %v1319_v38 = vadd.f32 %v1887_v34, %v1318_v36 }
 0x6de   :  { %1322 = vst [vmem:[%s2439_s20] sm:$0xff] %v1319_v38 }
 0x6e3   :  { %v1320_v39 = vpop.f32.mrf.mxu0 }

</bundles_post_ra>
